<compile_context>
chip_gen: v6e
topology: v6e:2x2x1
jax: 0.10.0
libtpu: 0.0.40
codegen_flags: <defaults>
</compile_context>

<pallas_src>
import jax
import jax.numpy as jnp
from jax.experimental import pallas as pl
from jax.experimental.pallas import tpu as pltpu


# ----------------------------------------------------------------------------
# Kernel: direct HBM -> HBM copy via async DMA (no VMEM staging).
# ----------------------------------------------------------------------------
def _make_dma_copy_kernel(rows, num_chunks):
    """Build a kernel that copies a (rows, hidden) HBM buffer to another HBM
    buffer with `num_chunks` contiguous, statically-sliced DMA streams."""
    rows_per = rows // num_chunks

    def kernel(x_hbm_ref, o_hbm_ref, sems):
        copies = []
        for c in range(num_chunks):           # static Python loop -> static slices
            sl = pl.ds(c * rows_per, rows_per)
            copies.append(
                pltpu.make_async_copy(x_hbm_ref.at[sl], o_hbm_ref.at[sl], sems.at[c])
            )
        for cp in copies:                      # start all streams back-to-back
            cp.start()
        for cp in copies:                      # then wait on all of them
            cp.wait()

    return kernel


# ----------------------------------------------------------------------------
# Forward
# ----------------------------------------------------------------------------
def encoder_forward(x, mask=None, *, materialize=False):
    """Pallas implementation of Encoder.forward (abstract -> identity encode).

    Args:
      x:    [batch, seq, hidden] token-level representation.
      mask: [batch, seq] (accepted for API parity, unused).
      materialize: if False (default), return x directly (true zero-cost
        pass-through; no pallas_call, no hidden defensive copies).  If True,
        produce a fresh buffer via a single-pass HBM->HBM DMA copy kernel.

    Returns:
      [batch, seq, hidden] token-level vectors (== x).
    """
    del mask  # undefined semantics in the abstract base class

    if not materialize:
        # Zero-cost pass-through: no custom call, no DMA, no aliasing caveats.
        return x

    # Materialized copy: flatten to (rows, hidden) and issue direct HBM DMAs.
    orig_shape = x.shape
    hidden = orig_shape[-1]
    rows = x.size // hidden
    x2 = x.reshape(rows, hidden)

    # Two in-flight DMA streams when the row count splits evenly, else one.
    num_chunks = 2 if (rows >= 2 and rows % 2 == 0) else 1

    out2 = pl.pallas_call(
        _make_dma_copy_kernel(rows, num_chunks),
        out_shape=jax.ShapeDtypeStruct((rows, hidden), x2.dtype),
        in_specs=[pl.BlockSpec(memory_space=pl.ANY)],   # stay in HBM
        out_specs=pl.BlockSpec(memory_space=pl.ANY),    # stay in HBM
        scratch_shapes=[pltpu.SemaphoreType.DMA((num_chunks,))],
    )(x2)
    return out2.reshape(orig_shape)


# ----------------------------------------------------------------------------
# Self-test
# ----------------------------------------------------------------------------
if __name__ == "__main__":
    key = jax.random.PRNGKey(0)
    kx, km = jax.random.split(key)
    batch, seq, hidden = 2, 8, 128
    x = jax.random.normal(kx, (batch, seq, hidden), dtype=jnp.float32)
    mask = (jax.random.uniform(km, (batch, seq)) > 0.2).astype(jnp.float32)

    # Default pass-through path (no kernel launch at all).
    out_pass = encoder_forward(x, mask)
    out_pass = jax.block_until_ready(out_pass)
    assert out_pass.shape == (batch, seq, hidden)
    assert jnp.allclose(out_pass, x), "pass-through mismatch"

    # Materialized path: fresh buffer via direct HBM->HBM DMA copy kernel.
    out_copy = encoder_forward(x, mask, materialize=True)
    out_copy = jax.block_until_ready(out_copy)
    assert out_copy.shape == (batch, seq, hidden)
    assert jnp.allclose(out_copy, x), "DMA-copy pass-through mismatch"

    print("KERNEL_OK")
</pallas_src>

<mosaic_0001>
module attributes {stable_mosaic.version = 11 : i64} {
  func.func @kernel(%arg0: memref<16x128xf32, #tpu.memory_space<any>>, %arg1: memref<16x128xf32, #tpu.memory_space<any>>, %arg2: memref<2x!tpu.dma_semaphore, #tpu.memory_space<semaphore_mem>>) attributes {dimension_semantics = [], scalar_prefetch = 0 : i64, scratch_operands = 1 : i64, tpu.core_type = #tpu.core_type<tc>} {
    %c0_i32 = arith.constant 0 : i32
    %c0_i32_0 = arith.constant 0 : i32
    %c0_i32_1 = arith.constant 0 : i32
    %0 = tpu.memref_slice %arg0[%c0_i32_0, %c0_i32_1] : memref<16x128xf32, #tpu.memory_space<any>> -> memref<8x128xf32, #tpu.memory_space<any>>
    %c0_i32_2 = arith.constant 0 : i32
    %c0_i32_3 = arith.constant 0 : i32
    %1 = tpu.memref_slice %arg1[%c0_i32_2, %c0_i32_3] : memref<16x128xf32, #tpu.memory_space<any>> -> memref<8x128xf32, #tpu.memory_space<any>>
    %2 = tpu.memref_slice %arg2[%c0_i32] : memref<2x!tpu.dma_semaphore, #tpu.memory_space<semaphore_mem>> -> memref<1x!tpu.dma_semaphore, #tpu.memory_space<semaphore_mem>>
    %3 = tpu.memref_squeeze %2 : memref<1x!tpu.dma_semaphore, #tpu.memory_space<semaphore_mem>> -> memref<!tpu.dma_semaphore, #tpu.memory_space<semaphore_mem>>
    tpu.enqueue_dma source(%0 : memref<8x128xf32, #tpu.memory_space<any>>) target(%1 : memref<8x128xf32, #tpu.memory_space<any>>) target_semaphore(%3 : memref<!tpu.dma_semaphore, #tpu.memory_space<semaphore_mem>>)
    %c1_i32 = arith.constant 1 : i32
    %c8_i32 = arith.constant 8 : i32
    %c0_i32_4 = arith.constant 0 : i32
    %4 = tpu.memref_slice %arg0[%c8_i32, %c0_i32_4] : memref<16x128xf32, #tpu.memory_space<any>> -> memref<8x128xf32, #tpu.memory_space<any>>
    %c8_i32_5 = arith.constant 8 : i32
    %c0_i32_6 = arith.constant 0 : i32
    %5 = tpu.memref_slice %arg1[%c8_i32_5, %c0_i32_6] : memref<16x128xf32, #tpu.memory_space<any>> -> memref<8x128xf32, #tpu.memory_space<any>>
    %6 = tpu.memref_slice %arg2[%c1_i32] : memref<2x!tpu.dma_semaphore, #tpu.memory_space<semaphore_mem>> -> memref<1x!tpu.dma_semaphore, #tpu.memory_space<semaphore_mem>>
    %7 = tpu.memref_squeeze %6 : memref<1x!tpu.dma_semaphore, #tpu.memory_space<semaphore_mem>> -> memref<!tpu.dma_semaphore, #tpu.memory_space<semaphore_mem>>
    tpu.enqueue_dma source(%4 : memref<8x128xf32, #tpu.memory_space<any>>) target(%5 : memref<8x128xf32, #tpu.memory_space<any>>) target_semaphore(%7 : memref<!tpu.dma_semaphore, #tpu.memory_space<semaphore_mem>>)
    %c0_i32_7 = arith.constant 0 : i32
    %c0_i32_8 = arith.constant 0 : i32
    %c0_i32_9 = arith.constant 0 : i32
    %8 = tpu.memref_slice %arg0[%c0_i32_8, %c0_i32_9] : memref<16x128xf32, #tpu.memory_space<any>> -> memref<8x128xf32, #tpu.memory_space<any>>
    %c0_i32_10 = arith.constant 0 : i32
    %c0_i32_11 = arith.constant 0 : i32
    %9 = tpu.memref_slice %arg1[%c0_i32_10, %c0_i32_11] : memref<16x128xf32, #tpu.memory_space<any>> -> memref<8x128xf32, #tpu.memory_space<any>>
    %10 = tpu.memref_slice %arg2[%c0_i32_7] : memref<2x!tpu.dma_semaphore, #tpu.memory_space<semaphore_mem>> -> memref<1x!tpu.dma_semaphore, #tpu.memory_space<semaphore_mem>>
    %11 = tpu.memref_squeeze %10 : memref<1x!tpu.dma_semaphore, #tpu.memory_space<semaphore_mem>> -> memref<!tpu.dma_semaphore, #tpu.memory_space<semaphore_mem>>
    tpu.wait_dma2 semaphore(%11 : memref<!tpu.dma_semaphore, #tpu.memory_space<semaphore_mem>>) src(%8 : memref<8x128xf32, #tpu.memory_space<any>>) dst(%9 : memref<8x128xf32, #tpu.memory_space<any>>)
    %c1_i32_12 = arith.constant 1 : i32
    %c8_i32_13 = arith.constant 8 : i32
    %c0_i32_14 = arith.constant 0 : i32
    %12 = tpu.memref_slice %arg0[%c8_i32_13, %c0_i32_14] : memref<16x128xf32, #tpu.memory_space<any>> -> memref<8x128xf32, #tpu.memory_space<any>>
    %c8_i32_15 = arith.constant 8 : i32
    %c0_i32_16 = arith.constant 0 : i32
    %13 = tpu.memref_slice %arg1[%c8_i32_15, %c0_i32_16] : memref<16x128xf32, #tpu.memory_space<any>> -> memref<8x128xf32, #tpu.memory_space<any>>
    %14 = tpu.memref_slice %arg2[%c1_i32_12] : memref<2x!tpu.dma_semaphore, #tpu.memory_space<semaphore_mem>> -> memref<1x!tpu.dma_semaphore, #tpu.memory_space<semaphore_mem>>
    %15 = tpu.memref_squeeze %14 : memref<1x!tpu.dma_semaphore, #tpu.memory_space<semaphore_mem>> -> memref<!tpu.dma_semaphore, #tpu.memory_space<semaphore_mem>>
    tpu.wait_dma2 semaphore(%15 : memref<!tpu.dma_semaphore, #tpu.memory_space<semaphore_mem>>) src(%12 : memref<8x128xf32, #tpu.memory_space<any>>) dst(%13 : memref<8x128xf32, #tpu.memory_space<any>>)
    return
  }
}

</mosaic_0001>

<bundles_post_ra>
// kernel: tpu_custom_call.1
= control target key start
LH: loop header
LB: loop body
LE: loop exit
PB: predicated region body
PF: predicated region fallthrough
CT: control target
= control target key end

     0   :  { %s51_s9 = smov [#allocation2]   ;;  %s52_s10 = smov 131072   ;;  %s77_s0 = inlined_call_operand.hbm [shape: f32[16,128], index: 0, kind: input, shape index: {}]   ;;  %s78_s1 = inlined_call_operand.hbm [shape: f32[16,128], index: 1, kind: output, shape index: {}]  }
   0x1   :  { %s13_s8 = scalar_lea.hbm %s77_s0, 128  ;;  %s53_s11 = smov 0  }
   0x2   :  { %12 = dma.general %s77_s0, 128, %s78_s1, %s51_s9, %s52_s10, [#allocation4], %s53_s11, 0  }
   0x3   :  { %s14_s18 = scalar_lea.hbm %s78_s1, 128  ;;  %s54_s19 = smov [#allocation2 + $0x1]  }
   0x4   :  { %22 = dma.general %s13_s8, 128, %s14_s18, %s54_s19, %s52_s10, [#allocation6], %s53_s11, 0  }
   0x5   :  { %47 = dma.done.wait [#allocation2], 128 }
   0x6   :  { %48 = vsyncadd [#allocation2], 4294967168 }
   0x7   :  { %49 = dma.done.wait [#allocation2 + $0x1], 128 }
   0x8   :  { %50 = vsyncadd [#allocation2 + $0x1], 4294967168 }
   0x9   :  { %28 = vsyncmov [#allocation2] }
   0xc   :  { %s29_s20 = vpop.sfrf %28 }
   0xd   :  { %p41_p0 = scmp.ne.s32.totalorder %s29_s20, 0 }
   0xf   :  { %33 = shalt.err (%p41_p0)  }
  0x10   :  { %35 = vsyncmov [#allocation2 + $0x1] }
  0x13   :  { %s36_s21 = vpop.sfrf %35 }
  0x14   :  { %p42_p1 = scmp.ne.s32.totalorder %s36_s21, 0 }
  0x16   :  { %40 = shalt.err (%p42_p1)  }

</bundles_post_ra>
